<compile_context>
chip_gen: v7x
topology: tpu7x:2x2x1
jax: 0.10.0
libtpu: 0.0.40
codegen_flags: <defaults>
</compile_context>

<pallas_src>
import functools

import jax
import jax.numpy as jnp
from jax.experimental import pallas as pl
from jax.experimental.pallas import tpu as pltpu

ALPHA = 0.95
GAMMA = 1              # gamma == 1 -> the pow is elided entirely
LANES = 128
SUBLANES = 8
# ~2 MiB of input DMA per grid step (both inputs combined): keeps the ~0.35 us
# fixed per-step cost well under 20% of step time even at v7x's 3.2 TB/s.
TARGET_IN_BYTES_PER_STEP = 2 * 1024 * 1024
MAX_TILE_ROWS = 8192   # hard cap on tile height (bounds f32 temporaries in VMEM)
NSPLIT = 2             # leading "parallel" axis -> megacore split on 2-TC chips


def _tensorcores_per_chip() -> int:
    """Best-effort TensorCores-per-chip count (v5e/v6e = 1; v4/v5p/v7x = 2)."""
    try:
        kind = jax.devices()[0].device_kind.lower()
    except Exception:
        return 1
    if "lite" in kind or "v5e" in kind or "v6e" in kind:
        return 1
    return 2


def _vmem_limit_bytes() -> int:
    """Scoped-VMEM limit: physical capacity minus headroom, capped at 64 MiB."""
    cap = 64 * 1024 * 1024
    try:
        cap = int(pltpu.get_tpu_info().vmem_capacity_bytes)
    except Exception:
        pass
    return max(16 * 1024 * 1024, min(64 * 1024 * 1024, cap - 16 * 1024 * 1024))


def _focal_loss_kernel(x_ref, t_ref, out_ref, acc_ref, *,
                       n_total, tiles_per_split, tile_rows):
    c = pl.program_id(0)   # megacore split (parallel)
    i = pl.program_id(1)   # sequential reduction axis

    @pl.when(i == 0)
    def _():
        acc_ref[...] = jnp.zeros_like(acc_ref)

    # Compute in f32; inputs travel over HBM in their native (possibly bf16) dtype.
    x = x_ref[...].astype(jnp.float32)
    t = t_ref[...].astype(jnp.float32)

    # Hard binary-target rewrite (t in {0, 1}, same assumption as the
    # `targets == 1` select in the reference module):
    #   z        = x if t == 0 else -x   ==  x * (1 - 2t)
    #   bce      = max(z, 0) + log1p(exp(-|z|))       (== BCE-with-logits)
    #   1 - pt   = sigmoid(z)                          (reuses the same exp)
    z = x * (1.0 - 2.0 * t)
    e = jnp.exp(-jnp.abs(z))
    bce = jnp.maximum(z, 0.0) + jnp.log1p(e)
    # NOTE(v7x tuning): pl.reciprocal(1.0 + e, approx=True) trades ~2^-14
    # relative error for one EUP push; kept exact here to hold rtol=1e-5.
    inv = 1.0 / (1.0 + e)
    one_minus_pt = jnp.where(z >= 0.0, inv, e * inv)   # == sigmoid(z)
    if GAMMA == 1:
        w = one_minus_pt
    else:
        w = one_minus_pt ** GAMMA
    loss = (ALPHA * w) * bce

    # Per-step partial reduction into a single-vreg (8, 128) accumulator: the
    # reshape stays on (8, 128) tile boundaries (free), the axis-0 sum is plain
    # VPU adds, and only one vreg of accumulator is read+written per step.
    row0 = (c * tiles_per_split + i) * tile_rows
    tile_full = (row0 + tile_rows) * LANES <= n_total

    @pl.when(tile_full)
    def _():  # common case: no iota / flat-index math / selects
        acc_ref[...] += loss.reshape(tile_rows // SUBLANES, SUBLANES, LANES).sum(axis=0)

    @pl.when(jnp.logical_not(tile_full))
    def _():  # ragged tail, lane padding, or clamped out-of-range tile
        row_ids = jax.lax.broadcasted_iota(jnp.int32, loss.shape, 0)
        lane_ids = jax.lax.broadcasted_iota(jnp.int32, loss.shape, 1)
        flat_idx = (row0 + row_ids) * LANES + lane_ids
        masked = jnp.where(flat_idx < n_total, loss, 0.0)
        acc_ref[...] += masked.reshape(tile_rows // SUBLANES, SUBLANES, LANES).sum(axis=0)

    @pl.when(i == pl.num_programs(1) - 1)
    def _():
        out_ref[...] = jnp.sum(acc_ref[...]).reshape(1, 1, 1)


def focal_loss(inputs, targets):
    """Focal loss (alpha=0.95, gamma=1, reduction='mean') for arbitrary shapes."""
    assert inputs.shape == targets.shape
    n_total = int(inputs.size)

    flat_x = inputs.reshape(-1)
    flat_t = targets.reshape(-1)
    rem = n_total % LANES
    if rem:
        # Pad at most 127 elements so the data can be viewed as (rows, 128);
        # padded elements are masked in-kernel (exact mean denominator).
        pad = LANES - rem
        flat_x = jnp.pad(flat_x, (0, pad))
        flat_t = jnp.pad(flat_t, (0, pad))

    rows = flat_x.size // LANES
    x2d = flat_x.reshape(rows, LANES)   # keep native dtype (bf16 stays bf16 in HBM)
    t2d = flat_t.reshape(rows, LANES)

    # Dtype-aware tile height: keep DMA bytes per grid step ~constant so the
    # fixed per-step cost stays amortized when bf16 halves the bytes/element.
    bytes_per_row = LANES * (x2d.dtype.itemsize + t2d.dtype.itemsize)
    max_rows = TARGET_IN_BYTES_PER_STEP // bytes_per_row
    max_rows = max(SUBLANES, min(MAX_TILE_ROWS, (max_rows // SUBLANES) * SUBLANES))

    tile_rows = min(max_rows, pl.cdiv(rows, SUBLANES) * SUBLANES)
    num_tiles = pl.cdiv(rows, tile_rows)

    # Megacore split only where there are >= 2 TensorCores to shard over;
    # on single-TC v5e/v6e the split would just risk a wasted clamped tile.
    nsplit = NSPLIT if (num_tiles >= NSPLIT and _tensorcores_per_chip() >= NSPLIT) else 1
    tiles_per_split = pl.cdiv(num_tiles, nsplit)

    def in_index_map(c, i):
        # Clamp fully out-of-range (c, i) onto the last valid tile; the kernel's
        # mask (built from the unclamped index) zeroes its contribution.
        return (jnp.minimum(c * tiles_per_split + i, num_tiles - 1), 0)

    kernel = functools.partial(
        _focal_loss_kernel,
        n_total=n_total,
        tiles_per_split=tiles_per_split,
        tile_rows=tile_rows,
    )

    cost = pl.CostEstimate(
        flops=16 * n_total,
        transcendentals=2 * n_total,
        bytes_accessed=int(x2d.size) * x2d.dtype.itemsize
        + int(t2d.size) * t2d.dtype.itemsize
        + nsplit * 4,
    )

    partials = pl.pallas_call(
        kernel,
        out_shape=jax.ShapeDtypeStruct((nsplit, 1, 1), jnp.float32),
        grid_spec=pltpu.PrefetchScalarGridSpec(
            num_scalar_prefetch=0,
            grid=(nsplit, tiles_per_split),
            in_specs=[
                # NOTE(v7x tuning): pipeline_mode=pl.Buffered(3) could deepen the
                # input pipeline; with ~1-2 MiB tiles the default double-buffer
                # already covers the DMA, so it is left at the default here.
                pl.BlockSpec((tile_rows, LANES), in_index_map),
                pl.BlockSpec((tile_rows, LANES), in_index_map),
            ],
            out_specs=pl.BlockSpec((1, 1, 1), lambda c, i: (c, 0, 0)),
            scratch_shapes=[pltpu.VMEM((SUBLANES, LANES), jnp.float32)],
        ),
        compiler_params=pltpu.CompilerParams(
            dimension_semantics=("parallel", "arbitrary"),
            vmem_limit_bytes=_vmem_limit_bytes(),
        ),
        cost_estimate=cost,
    )(x2d, t2d)

    return jnp.sum(partials) / jnp.float32(n_total)


def focal_loss_ref(inputs, targets):
    x = inputs.astype(jnp.float32)
    t = targets.astype(jnp.float32)
    bce = jnp.maximum(x, 0.0) - x * t + jnp.log1p(jnp.exp(-jnp.abs(x)))
    p = jax.nn.sigmoid(x)
    pt = jnp.where(t == 1.0, p, 1.0 - p)
    loss = ALPHA * (1.0 - pt) ** GAMMA * bce
    return jnp.mean(loss)


if __name__ == "__main__":
    key = jax.random.PRNGKey(0)
    k1, k2, k3, k4, k5, k6 = jax.random.split(key, 6)

    # NCHW logits / binary targets, as the conv training loop would produce.
    x = jax.random.normal(k1, (2, 4, 16, 16), dtype=jnp.float32) * 2.0
    t = jax.random.bernoulli(k2, p=0.3, shape=(2, 4, 16, 16)).astype(jnp.float32)
    out = jax.block_until_ready(focal_loss(x, t))
    ref = jax.block_until_ready(focal_loss_ref(x, t))
    assert jnp.allclose(out, ref, rtol=1e-5, atol=1e-6), (out, ref)

    # Ragged shape (not a multiple of 8*128) exercises the masked-tail path.
    x2 = jax.random.normal(k3, (2, 3, 5, 7), dtype=jnp.float32)
    t2 = jax.random.bernoulli(k4, p=0.5, shape=(2, 3, 5, 7)).astype(jnp.float32)
    out2 = jax.block_until_ready(focal_loss(x2, t2))
    ref2 = jax.block_until_ready(focal_loss_ref(x2, t2))
    assert jnp.allclose(out2, ref2, rtol=1e-5, atol=1e-6), (out2, ref2)

    # bf16 inputs travel over HBM as bf16 (half the DMA bytes, doubled tile rows).
    xb = x.astype(jnp.bfloat16)
    tb = t.astype(jnp.bfloat16)
    out3 = jax.block_until_ready(focal_loss(xb, tb))
    ref3 = jax.block_until_ready(focal_loss_ref(xb, tb))
    assert jnp.allclose(out3, ref3, rtol=1e-4, atol=1e-5), (out3, ref3)

    # Larger map exercises multi-tile accumulation: one full tile (fast path)
    # plus one partial tile (masked path), and the megacore split on 2-TC chips.
    x4 = jax.random.normal(k5, (2, 4, 192, 192), dtype=jnp.float32)
    t4 = jax.random.bernoulli(k6, p=0.3, shape=(2, 4, 192, 192)).astype(jnp.float32)
    out4 = jax.block_until_ready(focal_loss(x4, t4))
    ref4 = jax.block_until_ready(focal_loss_ref(x4, t4))
    assert jnp.allclose(out4, ref4, rtol=2e-5, atol=1e-6), (out4, ref4)

    print("KERNEL_OK")
</pallas_src>

<mosaic_0001>
module attributes {stable_mosaic.version = 11 : i64} {
  func.func @_focal_loss_kernel(%arg0: i32, %arg1: i32, %arg2: memref<16x128xf32, #tpu.memory_space<vmem>>, %arg3: memref<16x128xf32, #tpu.memory_space<vmem>>, %arg4: memref<1x1x1xf32, #tpu.memory_space<vmem>>, %arg5: memref<8x128xf32, #tpu.memory_space<vmem>>) attributes {dimension_semantics = [#tpu.dimension_semantics<parallel>, #tpu.dimension_semantics<arbitrary>], iteration_bounds = array<i64: 1, 1>, scalar_prefetch = 0 : i64, scratch_operands = 1 : i64, tpu.core_type = #tpu.core_type<tc>, window_params = [{transform_indices = @transform_0, window_bounds = array<i64: 16, 128>}, {transform_indices = @transform_1, window_bounds = array<i64: 16, 128>}, {transform_indices = @transform_2, window_bounds = array<i64: 1, 1, 1>}]} {
    %c0_i32 = arith.constant 0 : i32
    %0 = arith.cmpi eq, %arg1, %c0_i32 : i32
    %1 = arith.extui %0 : i1 to i32
    %c0_i32_0 = arith.constant 0 : i32
    %2 = arith.cmpi ne, %1, %c0_i32_0 : i32
    scf.if %2 {
      %cst_16 = arith.constant 0.000000e+00 : f32
      %43 = vector.broadcast %cst_16 : f32 to vector<8x128xf32>
      %c0_17 = arith.constant 0 : index
      %c0_18 = arith.constant 0 : index
      %44 = vector.load %arg5[%c0_17, %c0_18] : memref<8x128xf32, #tpu.memory_space<vmem>>, vector<8x128xf32>
      tpu.vector_store %arg5[%c0_17, %c0_18], %43 {strides = array<i32>} : memref<8x128xf32, #tpu.memory_space<vmem>>, vector<8x128xf32>,
    } else {
    }
    %c0 = arith.constant 0 : index
    %c0_1 = arith.constant 0 : index
    %3 = vector.load %arg2[%c0, %c0_1] : memref<16x128xf32, #tpu.memory_space<vmem>>, vector<16x128xf32>
    %c0_2 = arith.constant 0 : index
    %c0_3 = arith.constant 0 : index
    %4 = vector.load %arg3[%c0_2, %c0_3] : memref<16x128xf32, #tpu.memory_space<vmem>>, vector<16x128xf32>
    %cst = arith.constant 2.000000e+00 : f32
    %5 = vector.broadcast %cst : f32 to vector<16x128xf32>
    %6 = arith.mulf %5, %4 : vector<16x128xf32>
    %cst_4 = arith.constant 1.000000e+00 : f32
    %7 = vector.broadcast %cst_4 : f32 to vector<16x128xf32>
    %8 = arith.subf %7, %6 : vector<16x128xf32>
    %9 = arith.mulf %3, %8 : vector<16x128xf32>
    %10 = math.absf %9 : vector<16x128xf32>
    %cst_5 = arith.constant 0.000000e+00 : f32
    %11 = vector.broadcast %cst_5 : f32 to vector<16x128xf32>
    %12 = arith.subf %11, %10 : vector<16x128xf32>
    %13 = math.exp %12 : vector<16x128xf32>
    %cst_6 = arith.constant 0.000000e+00 : f32
    %14 = vector.broadcast %cst_6 : f32 to vector<16x128xf32>
    %15 = arith.maximumf %9, %14 : vector<16x128xf32>
    %16 = math.log1p %13 : vector<16x128xf32>
    %17 = arith.addf %15, %16 : vector<16x128xf32>
    %cst_7 = arith.constant 1.000000e+00 : f32
    %18 = vector.broadcast %cst_7 : f32 to vector<16x128xf32>
    %19 = arith.addf %18, %13 : vector<16x128xf32>
    %cst_8 = arith.constant 1.000000e+00 : f32
    %20 = vector.broadcast %cst_8 : f32 to vector<16x128xf32>
    %21 = arith.divf %20, %19 : vector<16x128xf32>
    %cst_9 = arith.constant 0.000000e+00 : f32
    %22 = vector.broadcast %cst_9 : f32 to vector<16x128xf32>
    %23 = arith.cmpf oge, %9, %22 : vector<16x128xf32>
    %24 = arith.mulf %13, %21 : vector<16x128xf32>
    %25 = arith.select %23, %21, %24 : vector<16x128xi1>, vector<16x128xf32>
    %cst_10 = arith.constant 0.949999988 : f32
    %26 = vector.broadcast %cst_10 : f32 to vector<16x128xf32>
    %27 = arith.mulf %26, %25 : vector<16x128xf32>
    %28 = arith.mulf %27, %17 : vector<16x128xf32>
    %c1_i32 = arith.constant 1 : i32
    %29 = arith.muli %arg0, %c1_i32 : i32
    %30 = arith.addi %29, %arg1 : i32
    %c16_i32 = arith.constant 16 : i32
    %31 = arith.muli %30, %c16_i32 : i32
    %c16_i32_11 = arith.constant 16 : i32
    %32 = arith.addi %31, %c16_i32_11 : i32
    %c128_i32 = arith.constant 128 : i32
    %33 = arith.muli %32, %c128_i32 : i32
    %c2048_i32 = arith.constant 2048 : i32
    %34 = arith.cmpi sle, %33, %c2048_i32 : i32
    %35 = arith.extui %34 : i1 to i32
    %c0_i32_12 = arith.constant 0 : i32
    %36 = arith.cmpi ne, %35, %c0_i32_12 : i32
    scf.if %36 {
      %c0_16 = arith.constant 0 : index
      %c0_17 = arith.constant 0 : index
      %43 = vector.load %arg5[%c0_16, %c0_17] : memref<8x128xf32, #tpu.memory_space<vmem>>, vector<8x128xf32>
      %44 = vector.shape_cast %28 : vector<16x128xf32> to vector<2x8x128xf32>
      %cst_18 = arith.constant dense<0.000000e+00> : vector<8x128xf32>
      %45 = vector.multi_reduction <add>, %44, %cst_18 [0] : vector<2x8x128xf32> to vector<8x128xf32>
      %46 = arith.addf %43, %45 : vector<8x128xf32>
      %c0_19 = arith.constant 0 : index
      %c0_20 = arith.constant 0 : index
      %47 = vector.load %arg5[%c0_19, %c0_20] : memref<8x128xf32, #tpu.memory_space<vmem>>, vector<8x128xf32>
      tpu.vector_store %arg5[%c0_19, %c0_20], %46 {strides = array<i32>} : memref<8x128xf32, #tpu.memory_space<vmem>>, vector<8x128xf32>,
    } else {
    }
    %true = arith.constant true
    %37 = arith.xori %34, %true : i1
    %38 = arith.extui %37 : i1 to i32
    %c0_i32_13 = arith.constant 0 : i32
    %39 = arith.cmpi ne, %38, %c0_i32_13 : i32
    scf.if %39 {
      %43 = tpu.iota {dimensions = array<i32: 0>} : vector<16x128xi32>
      %44 = tpu.iota {dimensions = array<i32: 1>} : vector<16x128xi32>
      %45 = vector.broadcast %31 : i32 to vector<16x128xi32>
      %46 = arith.addi %45, %43 : vector<16x128xi32>
      %c128_i32_16 = arith.constant 128 : i32
      %47 = vector.broadcast %c128_i32_16 : i32 to vector<16x128xi32>
      %48 = arith.muli %46, %47 : vector<16x128xi32>
      %49 = arith.addi %48, %44 : vector<16x128xi32>
      %c2048_i32_17 = arith.constant 2048 : i32
      %50 = vector.broadcast %c2048_i32_17 : i32 to vector<16x128xi32>
      %51 = arith.cmpi slt, %49, %50 : vector<16x128xi32>
      %cst_18 = arith.constant 0.000000e+00 : f32
      %52 = vector.broadcast %cst_18 : f32 to vector<16x128xf32>
      %53 = arith.select %51, %28, %52 : vector<16x128xi1>, vector<16x128xf32>
      %c0_19 = arith.constant 0 : index
      %c0_20 = arith.constant 0 : index
      %54 = vector.load %arg5[%c0_19, %c0_20] : memref<8x128xf32, #tpu.memory_space<vmem>>, vector<8x128xf32>
      %55 = vector.shape_cast %53 : vector<16x128xf32> to vector<2x8x128xf32>
      %cst_21 = arith.constant dense<0.000000e+00> : vector<8x128xf32>
      %56 = vector.multi_reduction <add>, %55, %cst_21 [0] : vector<2x8x128xf32> to vector<8x128xf32>
      %57 = arith.addf %54, %56 : vector<8x128xf32>
      %c0_22 = arith.constant 0 : index
      %c0_23 = arith.constant 0 : index
      %58 = vector.load %arg5[%c0_22, %c0_23] : memref<8x128xf32, #tpu.memory_space<vmem>>, vector<8x128xf32>
      tpu.vector_store %arg5[%c0_22, %c0_23], %57 {strides = array<i32>} : memref<8x128xf32, #tpu.memory_space<vmem>>, vector<8x128xf32>,
    } else {
    }
    %c0_i32_14 = arith.constant 0 : i32
    %40 = arith.cmpi eq, %arg1, %c0_i32_14 : i32
    %41 = arith.extui %40 : i1 to i32
    %c0_i32_15 = arith.constant 0 : i32
    %42 = arith.cmpi ne, %41, %c0_i32_15 : i32
    scf.if %42 {
      %c0_16 = arith.constant 0 : index
      %c0_17 = arith.constant 0 : index
      %43 = vector.load %arg5[%c0_16, %c0_17] : memref<8x128xf32, #tpu.memory_space<vmem>>, vector<8x128xf32>
      %44 = vector.shape_cast %43 : vector<8x128xf32> to vector<1x8x128xf32>
      %cst_18 = arith.constant dense<0.000000e+00> : vector<1xf32>
      %45 = vector.multi_reduction <add>, %44, %cst_18 [1, 2] : vector<1x8x128xf32> to vector<1xf32>
      %46 = vector.shape_cast %45 : vector<1xf32> to vector<1x1x1xf32>
      %47 = vector.extract %46[0, 0, 0] : f32 from vector<1x1x1xf32>
      %48 = vector.broadcast %47 : f32 to vector<1x1x1xf32>
      %c0_19 = arith.constant 0 : index
      %c0_20 = arith.constant 0 : index
      %c0_21 = arith.constant 0 : index
      %49 = vector.load %arg4[%c0_19, %c0_20, %c0_21] : memref<1x1x1xf32, #tpu.memory_space<vmem>>, vector<1x1x1xf32>
      tpu.vector_store %arg4[%c0_19, %c0_20, %c0_21], %48 {strides = array<i32>} : memref<1x1x1xf32, #tpu.memory_space<vmem>>, vector<1x1x1xf32>,
    } else {
    }
    return
  }
  func.func @transform_0(%arg0: i32, %arg1: i32) -> (i32, i32) {
    %c1_i32 = arith.constant 1 : i32
    %0 = arith.muli %arg0, %c1_i32 : i32
    %1 = arith.addi %0, %arg1 : i32
    %c0_i32 = arith.constant 0 : i32
    %2 = arith.minsi %1, %c0_i32 : i32
    %c0_i32_0 = arith.constant 0 : i32
    %c0_i32_1 = arith.constant 0 : i32
    return %2, %c0_i32_0 : i32, i32
  }
  func.func @transform_1(%arg0: i32, %arg1: i32) -> (i32, i32) {
    %c1_i32 = arith.constant 1 : i32
    %0 = arith.muli %arg0, %c1_i32 : i32
    %1 = arith.addi %0, %arg1 : i32
    %c0_i32 = arith.constant 0 : i32
    %2 = arith.minsi %1, %c0_i32 : i32
    %c0_i32_0 = arith.constant 0 : i32
    %c0_i32_1 = arith.constant 0 : i32
    return %2, %c0_i32_0 : i32, i32
  }
  func.func @transform_2(%arg0: i32, %arg1: i32) -> (i32, i32, i32) {
    %c0_i32 = arith.constant 0 : i32
    %c0_i32_0 = arith.constant 0 : i32
    %c0_i32_1 = arith.constant 0 : i32
    return %arg0, %c0_i32, %c0_i32_0 : i32, i32, i32
  }
}

</mosaic_0001>

<bundles_post_ra>
// kernel: tpu_custom_call.1
= control target key start
LH: loop header
LB: loop body
LE: loop exit
PB: predicated region body
PF: predicated region fallthrough
CT: control target
= control target key end

     0   :  { %7 = vsyncpa [#allocation4], 0  ;;  %s340_s0 = inlined_call_operand.hbm [shape: f32[16,128], index: 0, kind: input, shape index: {}]   ;;  %s341_s1 = inlined_call_operand.hbm [shape: f32[16,128], index: 1, kind: input, shape index: {}]   ;;  %s342_s2 = inlined_call_operand.hbm [shape: f32[1,1,1], index: 2, kind: output, shape index: {}]  }
   0x1   :  { %8 = vsyncpa [#allocation7], 0 }
   0x2   :  { %9 = vsyncpa [#allocation5], 0  ;;  %s284_s9 = smov [#allocation3]   ;;  %s212_s13 = scalar_lea.hbm %s340_s0, 256 }
   0x3   :  { %s21_s10 = sshll.u32 %s284_s9, 4  ;;  %p213_p0 = scmp.ne.s32.totalorder %s340_s0, %s212_s13  ;;  %s22_s10 = int_to_ptr.vmem [resolvable:$true] %s21_s10 }
   0x4   :  { %p216_p1 = scmp.lt.u32.totalorder %s212_s13, %s340_s0 }
   0x6   :  { %p218_p2 = pnand %p216_p1, %p213_p0 }
   0x8   :  { %221 = shalt.err (!%p218_p2)
}
   0x9   :  { %s222_s18 = scalar_lea.vmem %s22_s10, 256  ;;  %p227_p4 = scmp.lt.s32.totalorder %s22_s10, %s22_s10 }
   0xa   :  { %p223_p3 = scmp.ne.s32.totalorder %s22_s10, %s222_s18  ;;  %p228_p5 = scmp.lt.s32.totalorder %s222_s18, %s222_s18 }
   0xc   :  { %p229_p6 = por %p228_p5, %p227_p4 }
   0xe   :  { %p230_p7 = pnand %p229_p6, %p223_p3 }
  0x10   :  { %233 = shalt.err (!%p230_p7)
}
  0x11   :  { %s285_s19 = smov 128   ;;  %s286_s20 = smov 8  }
  0x12   :  { %27 = dma.hbm_to_vmem [thread:$0]  %s340_s0, 256, %s22_s10, [#allocation4], %s285_s19, %s285_s19, %s286_s20  }
  0x13   :  { %s287_s23 = smov [#allocation6]   ;;  %s234_s27 = scalar_lea.hbm %s341_s1, 256 }
  0x14   :  { %s39_s24 = sshll.u32 %s287_s23, 4  ;;  %p235_p8 = scmp.ne.s32.totalorder %s341_s1, %s234_s27  ;;  %s40_s24 = int_to_ptr.vmem [resolvable:$true] %s39_s24 }
  0x15   :  { %p238_p9 = scmp.lt.u32.totalorder %s234_s27, %s341_s1 }
  0x17   :  { %p240_p10 = pnand %p238_p9, %p235_p8 }
  0x19   :  { %243 = shalt.err (!%p240_p10)
}
  0x1a   :  { %s244_s4 = scalar_lea.vmem %s40_s24, 256  ;;  %p249_p12 = scmp.lt.s32.totalorder %s40_s24, %s40_s24 }
  0x1b   :  { %p245_p11 = scmp.ne.s32.totalorder %s40_s24, %s244_s4  ;;  %p250_p13 = scmp.lt.s32.totalorder %s244_s4, %s244_s4 }
  0x1d   :  { %p251_p0 = por %p250_p13, %p249_p12 }
  0x1f   :  { %p252_p1 = pnand %p251_p0, %p245_p11 }
  0x21   :  { %255 = shalt.err (!%p252_p1)
}
  0x22   :  { %45 = dma.hbm_to_vmem [thread:$0]  %s341_s1, 256, %s40_s24, [#allocation7], %s285_s19, %s285_s19, %s286_s20  }
  0x23   :  { %278 = dma.done.wait [#allocation4], 256  }
  0x24   :  { %279 = vsyncadd [#allocation4], 4294967040 }
  0x25   :  { %280 = dma.done.wait [#allocation7], 256  }
  0x26   :  { %281 = vsyncadd [#allocation7], 4294967040  ;;  %v67_v0 = vld [vmem:[#allocation6] sm:$0xff]  ;;  %v68_v1 = vld [vmem:[#allocation6 + $0x8] sm:$0xff]  ;;  %s288_s1 = smov [#allocation8]   ;;  %vm171_vm4 = vcmask 0  }
  0x27   :  { %v69_v2 = vmul.f32 2.0, %v67_v0  ;;  %v65_v3 = vld [vmem:[#allocation3] sm:$0xff]  ;;  %v70_v4 = vmul.f32 2.0, %v68_v1  ;;  %v66_v5 = vld [vmem:[#allocation3 + $0x8] sm:$0xff]  ;;  %s179_s6 = sshll.u32 %s288_s1, 4  ;;  %s180_s6 = int_to_ptr.vmem [resolvable:$true] %s179_s6 }
  0x28   :  { %s256_s8 = scalar_lea.vmem %s180_s6, 16  ;;  %s260_s9 = scalar_lea.vmem %s180_s6, 32 }
  0x29   :  { %v71_v6 = vsub.f32 1.0, %v69_v2  ;;  %v72_v7 = vsub.f32 1.0, %v70_v4  ;;  %p257_p2 = scmp.ne.s32.totalorder %s180_s6, %s256_s8  ;;  %p261_p3 = scmp.lt.s32.totalorder %s180_s6, %s180_s6 }
  0x2a   :  { %p262_p4 = scmp.lt.s32.totalorder %s260_s9, %s256_s8 }
  0x2b   :  { %v73_v8 = vmul.f32 %v71_v6, %v65_v3  ;;  %v74_v9 = vmul.f32 %v72_v7, %v66_v5 }
  0x2c   :  { %p263_p5 = por %p262_p4, %p261_p3 }
  0x2d   :  { %v75_v10 = vand.u32 2147483647, %v73_v8  ;;  %v76_v11 = vand.u32 2147483647, %v74_v9  ;;  %v83_v28 = vmax.f32 %v73_v8, 0.0  ;;  %v84_v31 = vmax.f32 %v74_v9, 0.0 }
  0x2e   :  { %vm111_vm2 = vcmp.ge.f32.partialorder %v73_v8, 0.0  ;;  %vm112_vm3 = vcmp.ge.f32.partialorder %v74_v9, 0.0  ;;  %p264_p6 = pnand %p263_p5, %p257_p2 }
  0x2f   :  { %v77_v12 = vsub.f32 0.0, %v75_v10  ;;  %v78_v13 = vsub.f32 0.0, %v76_v11 }
  0x31   :  { %v79_v14 = vmul.f32 1.442695, %v77_v12  ;;  %v81_v15 = vmul.f32 1.442695, %v78_v13 }
  0x33   :  { %200 = vpow2.f32 %v79_v14 }
  0x34   :  { %202 = vpow2.f32 %v81_v15 }
  0x3d   :  { %v201_v16 = vpop.eup %200 }
  0x3e   :  { %v203_v17 = vpop.eup %202  ;;  %v85_v18 = vadd.f32 1.0, %v201_v16  ;;  %v88_v20 = vmul.f32 -0.5, %v201_v16  ;;  %v91_v23 = vand.u32 2147483647, %v201_v16 }
  0x3f   :  { %v94_v19 = vadd.f32 1.0, %v203_v17  ;;  %v97_v21 = vmul.f32 -0.5, %v203_v17  ;;  %v100_v25 = vand.u32 2147483647, %v203_v17 }
  0x40   :  { %204 = vlog2.f32 %v85_v18  ;;  %v89_v22 = vadd.f32 1.0, %v88_v20  ;;  %vm92_vm0 = vcmp.lt.f32.partialorder %v91_v23, 0.0004427343 }
  0x41   :  { %206 = vlog2.f32 %v94_v19  ;;  %v98_v24 = vadd.f32 1.0, %v97_v21  ;;  %vm101_vm1 = vcmp.lt.f32.partialorder %v100_v25, 0.0004427343 }
  0x42   :  { %208 = vrcp.f32 %v85_v18  ;;  %v90_v26 = vmul.f32 %v201_v16, %v89_v22 }
  0x43   :  { %210 = vrcp.f32 %v94_v19  ;;  %v99_v29 = vmul.f32 %v203_v17, %v98_v24 }
  0x4a   :  { %v205_v27 = vpop.eup %204 }
  0x4b   :  { %v207_v30 = vpop.eup %206  ;;  %v87_v32 = vmul.f32 0.6931472, %v205_v27 }
  0x4c   :  { %v209_v33 = vpop.eup %208  ;;  %v96_v34 = vmul.f32 0.6931472, %v207_v30 }
  0x4d   :  { %v211_v35 = vpop.eup %210  ;;  %v93_v36 = vsel %vm92_vm0, %v90_v26, %v87_v32  ;;  %v113_v37 = vmul.f32 %v209_v33, %v201_v16 }
  0x4e   :  { %v102_v38 = vsel %vm101_vm1, %v99_v29, %v96_v34  ;;  %v103_v39 = vadd.f32 %v93_v36, %v83_v28  ;;  %v114_v40 = vmul.f32 %v211_v35, %v203_v17 }
  0x4f   :  { %v104_v41 = vadd.f32 %v102_v38, %v84_v31  ;;  %v115_v42 = vsel %vm111_vm2, %v209_v33, %v113_v37 }
  0x50   :  { %v116_v43 = vsel %vm112_vm3, %v211_v35, %v114_v40  ;;  %v117_v44 = vmul.f32 0.95, %v115_v42 }
  0x51   :  { %v118_v45 = vmul.f32 0.95, %v116_v43 }
  0x52   :  { %v119_v46 = vmul.f32 %v117_v44, %v103_v39 }
  0x53   :  { %v120_v47 = vmul.f32 %v118_v45, %v104_v41 }
  0x55   :  { %v130_v48 = vadd.f32 %v120_v47, %v119_v46 }
  0x57   :  { %161 = vadd.xlane.f32.xlu0 %v130_v48 }
  0xe4   :  { %v162_v49 = vpop.xlane.xlu0 %161 }
  0xe5   :  { %v163_v50 = vrot.slane %v162_v49, 4 }
  0xe7   :  { %v164_v51 = vadd.f32 %v163_v50, %v162_v49 }
  0xe9   :  { %v165_v52 = vrot.slane %v164_v51, 2 }
  0xeb   :  { %v166_v53 = vadd.f32 %v165_v52, %v164_v51 }
  0xed   :  { %v167_v54 = vrot.slane %v166_v53, 1 }
  0xef   :  { %v168_v55 = vadd.f32 %v167_v54, %v166_v53 }
  0xf1   :  { %193 = vpush %v168_v55 }
 0x122   :  { %s194_s7 = spop %193 }
 0x123   :  { %v170_v56 = vstv %s194_s7 }
 0x124   :  { %172 = vst.msk [vmem:[#allocation8] sm:$0x1] %vm171_vm4, %v170_v56 }
 0x125   :  { %267 = shalt.err (!%p264_p6)
}
 0x126   :  { %s268_s12 = scalar_lea.hbm %s342_s2, 16 }
 0x127   :  { %p269_p7 = scmp.ne.s32.totalorder %s342_s2, %s268_s12  ;;  %p272_p8 = scmp.lt.u32.totalorder %s268_s12, %s342_s2 }
 0x129   :  { %p274_p9 = pnand %p272_p8, %p269_p7 }
 0x12b   :  { %277 = shalt.err (!%p274_p9)
}
 0x12c   :  { %182 = dma.vmem_to_hbm [thread:$0]  %s180_s6, 16, %s342_s2, [#allocation5]  }
 0x12d   :  { %282 = dma.done.wait [#allocation5], 16  }
 0x12e   :  { %283 = vsyncadd [#allocation5], 4294967280 }
 0x12f   :  { %186 = vsyncpa [#allocation4], 1 }
 0x130   :  { %187 = vsyncpa [#allocation7], 1 }
 0x131   :  { %188 = vsyncpa [#allocation5], 1 }

</bundles_post_ra>
